<compile_context>
chip_gen: v6e
topology: v6e:2x2x1
jax: 0.10.0
libtpu: 0.0.40
codegen_flags: <defaults>
</compile_context>

<pallas_src>
import functools

import jax
import jax.numpy as jnp
from jax.experimental import pallas as pl
from jax.experimental.pallas import tpu as pltpu


def _round_up(x, m):
    return -(-x // m) * m


# ----------------------------------------------------------------------------
# Fused kernel: a short chain of (F_out, F_in) @ (F_in, B_TILE) matmuls.
# refs = (x, W0, b0, W1, b1, ..., W_head, b_head, out)
#   x:      (F0, B_TILE)        bf16   features = C*T, batch on lanes
#   W_i:    (F_out_i, F_in_i)   bf16   block-Toeplitz conv / fused pool+head
#   b_i:    (F_out_i, 1)        f32
#   out:    (OUT_SUB, B_TILE)   f32    lane-dense logits (transposed)
# ----------------------------------------------------------------------------
def _convnet_kernel(*refs, n_mats):
    x_ref = refs[0]
    o_ref = refs[-1]

    h = x_ref[...]                                        # (F0, B) bf16
    for i in range(n_mats):
        w_ref = refs[1 + 2 * i]                           # (F_out, F_in) bf16
        b_ref = refs[2 + 2 * i]                           # (F_out, 1)   f32
        acc = jnp.dot(w_ref[...], h,
                      preferred_element_type=jnp.float32) + b_ref[...]
        if i < n_mats - 1:
            # Conv block: bias + ReLU in f32, re-quantize to bf16 for the MXU.
            # Padded feature rows are exact zeros (zero weights + zero bias).
            h = jnp.maximum(acc, 0.0).astype(jnp.bfloat16)
        else:
            # Fused mean-pool + Linear head (no activation).
            o_ref[...] = acc


# ----------------------------------------------------------------------------
# Host-side: fold a valid Conv1d into a dense (C_out*T_out, C_in*T_in) matrix.
# Row index = c_out*T_out + t_out, col index = c_in*T_in + t_in.
# ----------------------------------------------------------------------------
def _conv_as_matmul(w, b, t_in):
    c_out, c_in, k = w.shape
    t_out = t_in - k + 1
    m = jnp.zeros((c_out, t_out, c_in, t_in), jnp.float32)
    for tt in range(t_out):
        m = m.at[:, tt, :, tt:tt + k].set(w)
    return m.reshape(c_out * t_out, c_in * t_in), jnp.repeat(b, t_out), t_out


def convnet_forward(params, x, *, b_tile=256):
    N, C0, T0 = x.shape
    blocks = params["blocks"]
    lin_w, lin_b = params["lin_w"], params["lin_b"]
    out_ch, c_last = lin_w.shape

    # ---- Fold every layer into one dense (F_out, F_in) matmul. ----
    # Feature dims are padded to multiples of 8 sublanes; padded rows carry
    # zero weights + zero bias, and the next layer's padded columns are zero,
    # so the padding never leaks into real outputs.
    mats = []
    t = T0
    f_in = C0 * T0
    f_in_pad = _round_up(f_in, 8)
    f0_pad = f_in_pad
    for blk in blocks:
        W, b, t = _conv_as_matmul(blk["w"], blk["b"], t)
        f_out = W.shape[0]
        f_out_pad = _round_up(f_out, 8)
        Wp = jnp.zeros((f_out_pad, f_in_pad), jnp.float32).at[:f_out, :f_in].set(W)
        bp = jnp.zeros((f_out_pad, 1), jnp.float32).at[:f_out, 0].set(b)
        mats.append((Wp, bp))
        f_in, f_in_pad = f_out, f_out_pad

    # Mean over time + Linear head fused into a single matrix:
    # W_head[o, c*T_last + t] = lin_w[o, c] / T_last   (zero-padded lanes/rows)
    out_sub = _round_up(out_ch, 8)
    Wh = jnp.zeros((out_sub, f_in_pad), jnp.float32)
    Wh = Wh.at[:out_ch, :c_last * t].set(jnp.repeat(lin_w, t, axis=1) / float(t))
    bh = jnp.zeros((out_sub, 1), jnp.float32).at[:out_ch, 0].set(lin_b)
    mats.append((Wh, bh))

    # ---- Batch tiling: batch on the lane axis, B_TILE multiple of 128. ----
    b_tile = max(128, min(_round_up(b_tile, 128), _round_up(N, 128)))
    n_pad = _round_up(N, b_tile)
    x_bt = jnp.zeros((f0_pad, n_pad), jnp.bfloat16)
    x_bt = x_bt.at[:C0 * T0, :N].set(
        x.reshape(N, C0 * T0).T.astype(jnp.bfloat16))

    operands = [x_bt]
    in_specs = [pl.BlockSpec((f0_pad, b_tile), lambda i: (0, i))]
    for W, b in mats:
        operands += [W.astype(jnp.bfloat16), b]
        # Constant index_map => fetched once, VMEM-resident across the grid.
        in_specs += [pl.BlockSpec(W.shape, lambda i: (0, 0)),
                     pl.BlockSpec(b.shape, lambda i: (0, 0))]

    flops = 2 * n_pad * sum(W.shape[0] * W.shape[1] for W, _ in mats)
    bytes_accessed = (x_bt.size * 2 + out_sub * n_pad * 4
                      + sum(W.size * 2 + b.size * 4 for W, b in mats))

    out = pl.pallas_call(
        functools.partial(_convnet_kernel, n_mats=len(mats)),
        out_shape=jax.ShapeDtypeStruct((out_sub, n_pad), jnp.float32),
        grid=(n_pad // b_tile,),
        in_specs=in_specs,
        out_specs=pl.BlockSpec((out_sub, b_tile), lambda i: (0, i)),
        compiler_params=pltpu.CompilerParams(
            dimension_semantics=("parallel",)),       # batch tiles across TCs
        cost_estimate=pl.CostEstimate(flops=flops, transcendentals=0,
                                      bytes_accessed=bytes_accessed),
    )(*operands)
    # (OUT_SUB, N_pad) -> (N, out_ch); padded lanes/rows are discarded here.
    return out.T[:N, :out_ch]


# ----------------------------------------------------------------------------
# Parameters
# ----------------------------------------------------------------------------
def init_params(rng, layers, kernel_sizes, out_channels):
    blocks = []
    for in_ch, out_ch, ksz in zip(layers, layers[1:], kernel_sizes):
        rng, k1, k2 = jax.random.split(rng, 3)
        w = jax.random.normal(k1, (out_ch, in_ch, ksz), jnp.float32) \
            * (1.0 / (in_ch * ksz)) ** 0.5
        b = jax.random.normal(k2, (out_ch,), jnp.float32) * 0.1
        blocks.append(dict(w=w, b=b))
    rng, k1, k2 = jax.random.split(rng, 3)
    lin_w = jax.random.normal(k1, (out_channels, layers[-1]), jnp.float32) \
        * (1.0 / layers[-1]) ** 0.5
    lin_b = jax.random.normal(k2, (out_channels,), jnp.float32) * 0.1
    return dict(blocks=blocks, lin_w=lin_w, lin_b=lin_b)


# ----------------------------------------------------------------------------
# Pure-JAX reference (mirrors the PyTorch forward, with the same bf16 rounding
# of matmul operands the kernel uses) for a silent correctness check.
# Note: PyTorch's .squeeze() after the mean is a no-op for N > 1; we keep the
# (N, out_channels) output shape.
# ----------------------------------------------------------------------------
def convnet_reference(params, x):
    def bf16(a):
        return a.astype(jnp.bfloat16).astype(jnp.float32)

    out = x
    for p in params["blocks"]:
        conv = jax.lax.conv_general_dilated(
            bf16(out), bf16(p["w"]), window_strides=(1,), padding=[(0, 0)],
            dimension_numbers=("NCH", "OIH", "NCH"),
            precision=jax.lax.Precision.HIGHEST)
        out = jnp.maximum(conv + p["b"][None, :, None], 0.0)
    t_last = out.shape[2]
    # Kernel fuses mean-pool into the head weights (bf16(lin_w / T_last));
    # mirror that rounding here.
    w_pool = bf16(params["lin_w"] / t_last)                 # (OUT, C_last)
    logits = jnp.einsum("nct,oc->no", bf16(out), w_pool,
                        precision=jax.lax.Precision.HIGHEST)
    return logits + params["lin_b"][None, :]


if __name__ == "__main__":
    # ConvNet(layers=[4, 8, 16], out_channels=10, kernel_sizes=[3, 4])
    layers = [4, 8, 16]
    kernel_sizes = [3, 4]
    out_channels = 10

    root = jax.random.PRNGKey(0)
    k_params, k_x, k_x2 = jax.random.split(root, 3)
    params = init_params(k_params, layers, kernel_sizes, out_channels)

    N, C, T = 2, layers[0], 16
    x = jax.random.normal(k_x, (N, C, T), jnp.float32)

    y = jax.block_until_ready(convnet_forward(params, x))
    y_ref = convnet_reference(params, x)
    assert y.shape == (N, out_channels)
    assert jnp.allclose(y, y_ref, rtol=2e-3, atol=2e-3), "mismatch (N=2)"

    # Exercise the multi-tile grid and batch-padding path too.
    N2 = 260
    x2 = jax.random.normal(k_x2, (N2, C, T), jnp.float32)
    y2 = jax.block_until_ready(convnet_forward(params, x2))
    y2_ref = convnet_reference(params, x2)
    assert y2.shape == (N2, out_channels)
    assert jnp.allclose(y2, y2_ref, rtol=2e-3, atol=2e-3), "mismatch (N=260)"

    print("KERNEL_OK")
</pallas_src>

<mosaic_0001>
module attributes {stable_mosaic.version = 11 : i64} {
  func.func @_convnet_kernel(%arg0: i32, %arg1: memref<64x128xbf16, #tpu.memory_space<vmem>>, %arg2: memref<112x64xbf16, #tpu.memory_space<vmem>>, %arg3: memref<112x1xf32, #tpu.memory_space<vmem>>, %arg4: memref<176x112xbf16, #tpu.memory_space<vmem>>, %arg5: memref<176x1xf32, #tpu.memory_space<vmem>>, %arg6: memref<16x176xbf16, #tpu.memory_space<vmem>>, %arg7: memref<16x1xf32, #tpu.memory_space<vmem>>, %arg8: memref<16x128xf32, #tpu.memory_space<vmem>>) attributes {dimension_semantics = [#tpu.dimension_semantics<parallel>], iteration_bounds = array<i64: 1>, scalar_prefetch = 0 : i64, scratch_operands = 0 : i64, tpu.core_type = #tpu.core_type<tc>, window_params = [{transform_indices = @transform_0, window_bounds = array<i64: 64, 128>}, {pipeline_mode = #tpu.pipeline_mode<synchronous>, transform_indices = @transform_1, window_bounds = array<i64: 112, 64>}, {pipeline_mode = #tpu.pipeline_mode<synchronous>, transform_indices = @transform_2, window_bounds = array<i64: 112, 1>}, {pipeline_mode = #tpu.pipeline_mode<synchronous>, transform_indices = @transform_3, window_bounds = array<i64: 176, 112>}, {pipeline_mode = #tpu.pipeline_mode<synchronous>, transform_indices = @transform_4, window_bounds = array<i64: 176, 1>}, {pipeline_mode = #tpu.pipeline_mode<synchronous>, transform_indices = @transform_5, window_bounds = array<i64: 16, 176>}, {pipeline_mode = #tpu.pipeline_mode<synchronous>, transform_indices = @transform_6, window_bounds = array<i64: 16, 1>}, {transform_indices = @transform_7, window_bounds = array<i64: 16, 128>}]} {
    %c0 = arith.constant 0 : index
    %c0_0 = arith.constant 0 : index
    %0 = vector.load %arg1[%c0, %c0_0] : memref<64x128xbf16, #tpu.memory_space<vmem>>, vector<64x128xbf16>
    %c0_1 = arith.constant 0 : index
    %c0_2 = arith.constant 0 : index
    %1 = vector.load %arg2[%c0_1, %c0_2] : memref<112x64xbf16, #tpu.memory_space<vmem>>, vector<112x64xbf16>
    %cst = arith.constant dense<0.000000e+00> : vector<112x128xf32>
    %2 = tpu.matmul %1, %0, %cst {dimension_numbers = #tpu.dot_dimension_numbers<[1], [0], [0], [1], [0, 0, 1, 1], [], []>} : vector<112x64xbf16>, vector<64x128xbf16>, vector<112x128xf32> -> vector<112x128xf32>
    %c0_3 = arith.constant 0 : index
    %c0_4 = arith.constant 0 : index
    %3 = vector.load %arg3[%c0_3, %c0_4] : memref<112x1xf32, #tpu.memory_space<vmem>>, vector<112x1xf32>
    %4 = vector.broadcast %3 : vector<112x1xf32> to vector<112x128xf32>
    %5 = arith.addf %2, %4 : vector<112x128xf32>
    %cst_5 = arith.constant 0.000000e+00 : f32
    %6 = vector.broadcast %cst_5 : f32 to vector<112x128xf32>
    %7 = arith.maximumf %5, %6 : vector<112x128xf32>
    %8 = arith.truncf %7 : vector<112x128xf32> to vector<112x128xbf16>
    %c0_6 = arith.constant 0 : index
    %c0_7 = arith.constant 0 : index
    %9 = vector.load %arg4[%c0_6, %c0_7] : memref<176x112xbf16, #tpu.memory_space<vmem>>, vector<176x112xbf16>
    %cst_8 = arith.constant dense<0.000000e+00> : vector<176x128xf32>
    %10 = tpu.matmul %9, %8, %cst_8 {dimension_numbers = #tpu.dot_dimension_numbers<[1], [0], [0], [1], [0, 0, 1, 1], [], []>} : vector<176x112xbf16>, vector<112x128xbf16>, vector<176x128xf32> -> vector<176x128xf32>
    %c0_9 = arith.constant 0 : index
    %c0_10 = arith.constant 0 : index
    %11 = vector.load %arg5[%c0_9, %c0_10] : memref<176x1xf32, #tpu.memory_space<vmem>>, vector<176x1xf32>
    %12 = vector.broadcast %11 : vector<176x1xf32> to vector<176x128xf32>
    %13 = arith.addf %10, %12 : vector<176x128xf32>
    %cst_11 = arith.constant 0.000000e+00 : f32
    %14 = vector.broadcast %cst_11 : f32 to vector<176x128xf32>
    %15 = arith.maximumf %13, %14 : vector<176x128xf32>
    %16 = arith.truncf %15 : vector<176x128xf32> to vector<176x128xbf16>
    %c0_12 = arith.constant 0 : index
    %c0_13 = arith.constant 0 : index
    %17 = vector.load %arg6[%c0_12, %c0_13] : memref<16x176xbf16, #tpu.memory_space<vmem>>, vector<16x176xbf16>
    %cst_14 = arith.constant dense<0.000000e+00> : vector<16x128xf32>
    %18 = tpu.matmul %17, %16, %cst_14 {dimension_numbers = #tpu.dot_dimension_numbers<[1], [0], [0], [1], [0, 0, 1, 1], [], []>} : vector<16x176xbf16>, vector<176x128xbf16>, vector<16x128xf32> -> vector<16x128xf32>
    %c0_15 = arith.constant 0 : index
    %c0_16 = arith.constant 0 : index
    %19 = vector.load %arg7[%c0_15, %c0_16] : memref<16x1xf32, #tpu.memory_space<vmem>>, vector<16x1xf32>
    %20 = vector.broadcast %19 : vector<16x1xf32> to vector<16x128xf32>
    %21 = arith.addf %18, %20 : vector<16x128xf32>
    %c0_17 = arith.constant 0 : index
    %c0_18 = arith.constant 0 : index
    %22 = vector.load %arg8[%c0_17, %c0_18] : memref<16x128xf32, #tpu.memory_space<vmem>>, vector<16x128xf32>
    tpu.vector_store %arg8[%c0_17, %c0_18], %21 {strides = array<i32>} : memref<16x128xf32, #tpu.memory_space<vmem>>, vector<16x128xf32>,
    return
  }
  func.func @transform_0(%arg0: i32) -> (i32, i32) {
    %c0_i32 = arith.constant 0 : i32
    %c0_i32_0 = arith.constant 0 : i32
    return %c0_i32, %arg0 : i32, i32
  }
  func.func @transform_1(%arg0: i32) -> (i32, i32) {
    %c0_i32 = arith.constant 0 : i32
    %c0_i32_0 = arith.constant 0 : i32
    %c0_i32_1 = arith.constant 0 : i32
    return %c0_i32, %c0_i32_0 : i32, i32
  }
  func.func @transform_2(%arg0: i32) -> (i32, i32) {
    %c0_i32 = arith.constant 0 : i32
    %c0_i32_0 = arith.constant 0 : i32
    %c0_i32_1 = arith.constant 0 : i32
    return %c0_i32, %c0_i32_0 : i32, i32
  }
  func.func @transform_3(%arg0: i32) -> (i32, i32) {
    %c0_i32 = arith.constant 0 : i32
    %c0_i32_0 = arith.constant 0 : i32
    %c0_i32_1 = arith.constant 0 : i32
    return %c0_i32, %c0_i32_0 : i32, i32
  }
  func.func @transform_4(%arg0: i32) -> (i32, i32) {
    %c0_i32 = arith.constant 0 : i32
    %c0_i32_0 = arith.constant 0 : i32
    %c0_i32_1 = arith.constant 0 : i32
    return %c0_i32, %c0_i32_0 : i32, i32
  }
  func.func @transform_5(%arg0: i32) -> (i32, i32) {
    %c0_i32 = arith.constant 0 : i32
    %c0_i32_0 = arith.constant 0 : i32
    %c0_i32_1 = arith.constant 0 : i32
    return %c0_i32, %c0_i32_0 : i32, i32
  }
  func.func @transform_6(%arg0: i32) -> (i32, i32) {
    %c0_i32 = arith.constant 0 : i32
    %c0_i32_0 = arith.constant 0 : i32
    %c0_i32_1 = arith.constant 0 : i32
    return %c0_i32, %c0_i32_0 : i32, i32
  }
  func.func @transform_7(%arg0: i32) -> (i32, i32) {
    %c0_i32 = arith.constant 0 : i32
    %c0_i32_0 = arith.constant 0 : i32
    return %c0_i32, %arg0 : i32, i32
  }
}

</mosaic_0001>

<bundles_post_ra>
// kernel: tpu_custom_call.1
= control target key start
LH: loop header
LB: loop body
LE: loop exit
PB: predicated region body
PF: predicated region fallthrough
CT: control target
= control target key end

     0   :  { %v1029_v1 = vmov 0.0   ;;  %vm1030_vm0 = vmmov 0   ;;  %v1031_v3 = vmov 0   ;;  %vm193_vm1 = vcmask 523264   ;;  %s1387_s0 = inlined_call_operand.vmem [shape: bf16[64,128], index: 0, kind: input, shape index: {}]   ;;  %s1388_s1 = inlined_call_operand.vmem [shape: bf16[112,64], index: 1, kind: input, shape index: {}]   ;;  %s1389_s2 = inlined_call_operand.vmem [shape: f32[112,1], index: 2, kind: input, shape index: {}]   ;;  %s1390_s3 = inlined_call_operand.vmem [shape: bf16[176,112], index: 3, kind: input, shape index: {}]   ;;  %s1391_s4 = inlined_call_operand.vmem [shape: f32[176,1], index: 4, kind: input, shape index: {}]   ;;  %s1392_s5 = inlined_call_operand.vmem [shape: bf16[16,176], index: 5, kind: input, shape index: {}]   ;;  %s1393_s6 = inlined_call_operand.vmem [shape: f32[16,1], index: 6, kind: input, shape index: {}]   ;;  %s1394_s7 = inlined_call_operand.hbm [shape: f32[16,128], index: 7, kind: output, shape index: {}]  }
   0x1   :  { %v982_v0 = vld [vmem:[%s1387_s0 + $0x18] sm:$0xff]   ;;  %880 = vmatprep.subr.bf16.mxu0 %v1029_v1  ;;  %916 = vmatprep.subr.bf16.mxu1 %v1029_v1  ;;  %v983_v2 = vld [vmem:[%s1387_s0 + $0x10] sm:$0xff]   ;;  %v984_v4 = vld [vmem:[%s1387_s0 + $0x8] sm:$0xff]  }
   0x2   :  { %881 = vmatpush3.bf16.msra.mxu0 %v982_v0  ;;  %888 = vmatprep.mubr.msk.bf16.mxu0 %vm1030_vm0, %v1029_v1  ;;  %v985_v5 = vld [vmem:[%s1387_s0] sm:$0xff]   ;;  %v60_v7 = vld [vmem:[%s1389_s2 + $0x50] sm:$0xff]  ;;  %v63_v8 = vld [vmem:[%s1389_s2 + $0x68] sm:$0xff] }
   0x3   :  { %882 = vmatprep.subr.bf16.mxu0 %v1029_v1  ;;  %930 = vmatprep.mubr.msk.bf16.mxu1 %vm1030_vm0, %v1029_v1  ;;  %v62_v6 = vld [vmem:[%s1389_s2 + $0x60] sm:$0xff]  ;;  %v61_v10 = vld [vmem:[%s1389_s2 + $0x58] sm:$0xff]  ;;  %v59_v12 = vld [vmem:[%s1389_s2 + $0x48] sm:$0xff] }
   0x4   :  { %980 = vset.pattern.permute.xlu0 %v1031_v3  ;;  %981 = vset.pattern.permute.xlu1 %v1031_v3  ;;  %v986_v9 = vld [vmem:[%s1388_s1] sm:$0xff]   ;;  %v56_v13 = vld [vmem:[%s1389_s2 + $0x30] sm:$0xff]  ;;  %v987_v14 = vld [vmem:[%s1388_s1 + $0x8] sm:$0xff]  }
   0x5   :  { %126 = vperm.xlu0 %980, %v62_v6   ;;  %116 = vperm.xlu1 %981, %v60_v7   ;;  %v58_v11 = vld [vmem:[%s1389_s2 + $0x40] sm:$0xff]  ;;  %v57_v15 = vld [vmem:[%s1389_s2 + $0x38] sm:$0xff]  ;;  %v55_v17 = vld [vmem:[%s1389_s2 + $0x28] sm:$0xff] }
   0x6   :  { %883 = vmatpush3.bf16.msra.mxu0 %v983_v2  ;;  %v54_v16 = vld [vmem:[%s1389_s2 + $0x20] sm:$0xff]  ;;  %v52_v18 = vld [vmem:[%s1389_s2 + $0x10] sm:$0xff]  ;;  %v53_v20 = vld [vmem:[%s1389_s2 + $0x18] sm:$0xff] }
   0x7   :  { %884 = vmatprep.subr.bf16.mxu0 %v1029_v1  ;;  %v988_v19 = vld [vmem:[%s1388_s1 + $0x10] sm:$0xff]  }
   0x9   :  { %131 = vperm.xlu0 %980, %v63_v8   ;;  %121 = vperm.xlu1 %981, %v61_v10  }
   0xa   :  { %885 = vmatpush3.bf16.msra.mxu0 %v984_v4 }
   0xb   :  { %886 = vmatprep.subr.bf16.mxu0 %v1029_v1 }
   0xd   :  { %106 = vperm.xlu0 %980, %v58_v11   ;;  %111 = vperm.xlu1 %981, %v59_v12  }
   0xe   :  { %887 = vmatpush3.bf16.msra.mxu0 %v985_v5 }
   0xf   :  { %749 = vmatprep.subr.bf16.mxu0 %v1031_v3 }
  0x11   :  { %889 = vmatmul.mubr.msk.bf16.vlgmr.msra.gmra.mxu0 %vm193_vm1, %v986_v9  ;;  %96 = vperm.xlu0 %980, %v56_v13  }
  0x12   :  { %892 = vmatprep.mubr.msk.bf16.mxu0 %vm1030_vm0, %v1029_v1  ;;  %101 = vperm.xlu1 %981, %v57_v15  }
  0x15   :  { %86 = vperm.xlu0 %980, %v54_v16  }
  0x16   :  { %91 = vperm.xlu1 %981, %v55_v17  }
  0x19   :  { %893 = vmatmul.mubr.msk.bf16.gmra.mxu0 %vm193_vm1, %v987_v14  ;;  %76 = vperm.xlu0 %980, %v52_v18  }
  0x1a   :  { %896 = vmatprep.mubr.msk.bf16.mxu0 %vm1030_vm0, %v1029_v1 }
  0x1b   :  { %12 = vsyncpa [#allocation3], 0  ;;  %81 = vperm.xlu1 %981, %v53_v20   ;;  %v50_v21 = vld [vmem:[%s1389_s2] sm:$0xff]  ;;  %v51_v22 = vld [vmem:[%s1389_s2 + $0x8] sm:$0xff]  ;;  %vm534_vm2 = vcmask 916480   ;;  %vm745_vm3 = vcmask 392192  }
  0x1c   :  { %v361_v23 = vld [vmem:[%s1391_s4 + $0x70] sm:$0xff]  ;;  %v989_v24 = vld [vmem:[%s1388_s1 + $0x18] sm:$0xff]   ;;  %v359_v26 = vld [vmem:[%s1391_s4 + $0x60] sm:$0xff]  ;;  %s1032_s20 = smov [#allocation2]  }
  0x1d   :  { %66 = vperm.xlu0 %980, %v50_v21   ;;  %v362_v25 = vld [vmem:[%s1391_s4 + $0x78] sm:$0xff]  ;;  %v360_v27 = vld [vmem:[%s1391_s4 + $0x68] sm:$0xff]  ;;  %v357_v28 = vld [vmem:[%s1391_s4 + $0x50] sm:$0xff]  ;;  %s797_s21 = sshll.u32 %s1032_s20, 4  ;;  %s798_s21 = int_to_ptr.vmem [resolvable:$true] %s797_s21 }
  0x1e   :  { %v990_v29 = vld [vmem:[%s1388_s1 + $0x20] sm:$0xff]   ;;  %v358_v30 = vld [vmem:[%s1391_s4 + $0x58] sm:$0xff]  ;;  %v356_v32 = vld [vmem:[%s1391_s4 + $0x48] sm:$0xff]  ;;  %s1007_s22 = scalar_lea.vmem %s798_s21, 256  ;;  %p1012_p1 = scmp.lt.s32.totalorder %s798_s21, %s798_s21 }
  0x1f   :  { %71 = vperm.xlu1 %981, %v51_v22   ;;  %v355_v31 = vld [vmem:[%s1391_s4 + $0x40] sm:$0xff]  ;;  %v353_v33 = vld [vmem:[%s1391_s4 + $0x30] sm:$0xff]  ;;  %v991_v34 = vld [vmem:[%s1388_s1 + $0x28] sm:$0xff]   ;;  %p1008_p0 = scmp.ne.s32.totalorder %s798_s21, %s1007_s22  ;;  %p1013_p2 = scmp.lt.s32.totalorder %s1007_s22, %s1007_s22 }
  0x20   :  { %v354_v35 = vld [vmem:[%s1391_s4 + $0x38] sm:$0xff]  ;;  %v351_v36 = vld [vmem:[%s1391_s4 + $0x20] sm:$0xff]  ;;  %v352_v37 = vld [vmem:[%s1391_s4 + $0x28] sm:$0xff] }
  0x21   :  { %897 = vmatmul.mubr.msk.bf16.gmra.mxu0 %vm193_vm1, %v988_v19  ;;  %441 = vperm.xlu0 %980, %v361_v23   ;;  %v349_v38 = vld [vmem:[%s1391_s4 + $0x10] sm:$0xff]  ;;  %v350_v40 = vld [vmem:[%s1391_s4 + $0x18] sm:$0xff]  ;;  %v347_v41 = vld [vmem:[%s1391_s4] sm:$0xff]  ;;  %p1014_p3 = por %p1013_p2, %p1012_p1 }
  0x22   :  { %900 = vmatprep.mubr.msk.bf16.mxu0 %vm1030_vm0, %v1029_v1  ;;  %v992_v39 = vld [vmem:[%s1388_s1 + $0x30] sm:$0xff]   ;;  %v348_v42 = vld [vmem:[%s1391_s4 + $0x8] sm:$0xff]  ;;  %v367_v43 = vld [vmem:[%s1391_s4 + $0xa0] sm:$0xff] }
  0x23   :  { %446 = vperm.xlu1 %981, %v362_v25   ;;  %v368_v44 = vld [vmem:[%s1391_s4 + $0xa8] sm:$0xff]  ;;  %v365_v45 = vld [vmem:[%s1391_s4 + $0x90] sm:$0xff]  ;;  %v366_v46 = vld [vmem:[%s1391_s4 + $0x98] sm:$0xff]  ;;  %p1015_p4 = pnand %p1014_p3, %p1008_p0 }
  0x24   :  { %v363_v47 = vld [vmem:[%s1391_s4 + $0x80] sm:$0xff]  ;;  %v364_v48 = vld [vmem:[%s1391_s4 + $0x88] sm:$0xff] }
  0x25   :  { %431 = vperm.xlu0 %980, %v359_v26   ;;  %v724_v49 = vld [vmem:[%s1393_s6] sm:$0xff]  ;;  %v725_v50 = vld [vmem:[%s1393_s6 + $0x8] sm:$0xff] }
  0x27   :  { %436 = vperm.xlu1 %981, %v360_v27  }
  0x29   :  { %901 = vmatmul.mubr.msk.bf16.gmra.mxu0 %vm193_vm1, %v989_v24  ;;  %421 = vperm.xlu0 %980, %v357_v28  }
  0x2a   :  { %904 = vmatprep.mubr.msk.bf16.mxu0 %vm1030_vm0, %v1029_v1 }
  0x2b   :  { %426 = vperm.xlu1 %981, %v358_v30  }
  0x2d   :  { %411 = vperm.xlu0 %980, %v355_v31  }
  0x2f   :  { %416 = vperm.xlu1 %981, %v356_v32  }
  0x31   :  { %905 = vmatmul.mubr.msk.bf16.gmra.mxu0 %vm193_vm1, %v990_v29  ;;  %401 = vperm.xlu0 %980, %v353_v33  }
  0x32   :  { %908 = vmatprep.mubr.msk.bf16.mxu0 %vm1030_vm0, %v1029_v1 }
  0x33   :  { %406 = vperm.xlu1 %981, %v354_v35  }
  0x35   :  { %391 = vperm.xlu0 %980, %v351_v36  }
  0x37   :  { %396 = vperm.xlu1 %981, %v352_v37  }
  0x39   :  { %909 = vmatmul.mubr.msk.bf16.gmra.mxu0 %vm193_vm1, %v991_v34  ;;  %381 = vperm.xlu0 %980, %v349_v38  }
  0x3a   :  { %912 = vmatprep.mubr.msk.bf16.mxu0 %vm1030_vm0, %v1029_v1 }
  0x3b   :  { %386 = vperm.xlu1 %981, %v350_v40  }
  0x3d   :  { %371 = vperm.xlu0 %980, %v347_v41  }
  0x3f   :  { %376 = vperm.xlu1 %981, %v348_v42  }
  0x41   :  { %913 = vmatmul.mubr.msk.bf16.gmra.mxu0 %vm193_vm1, %v992_v39  ;;  %471 = vperm.xlu0 %980, %v367_v43  }
  0x43   :  { %476 = vperm.xlu1 %981, %v368_v44  }
  0x45   :  { %461 = vperm.xlu0 %980, %v365_v45  }
  0x47   :  { %466 = vperm.xlu1 %981, %v366_v46  }
  0x49   :  { %451 = vperm.xlu0 %980, %v363_v47  }
  0x4b   :  { %456 = vperm.xlu1 %981, %v364_v48  }
  0x4d   :  { %728 = vperm.xlu0 %980, %v724_v49  }
  0x4f   :  { %733 = vperm.xlu1 %981, %v725_v50  }
  0x80   :  { %v127_v51 = vpop.permute.xlu0 %126  ;;  %v117_v52 = vpop.permute.xlu1 %116 }
  0x84   :  { %v132_v53 = vpop.permute.xlu0 %131  ;;  %v122_v54 = vpop.permute.xlu1 %121 }
  0x88   :  { %v107_v55 = vpop.permute.xlu0 %106  ;;  %v112_v56 = vpop.permute.xlu1 %111 }
  0x8c   :  { %v97_v57 = vpop.permute.xlu0 %96 }
  0x8d   :  { %v102_v58 = vpop.permute.xlu1 %101 }
  0x90   :  { %v87_v59 = vpop.permute.xlu0 %86 }
  0x91   :  { %v92_v60 = vpop.permute.xlu1 %91 }
  0x94   :  { %v1253_v61 = vpop.permute.xlu0 %76 }
  0x96   :  { %v1255_v62 = vpop.permute.xlu1 %81 }
  0x98   :  { %v67_v63 = vpop.permute.xlu0 %66 }
  0x9a   :  { %v72_v4 = vpop.permute.xlu1 %71 }
  0xd1   :  { %v249_v0 = vpop.f32.mrf.mxu0 }
  0xd2   :  { %v250_v5 = vadd.f32 %v249_v0, %v67_v63 }
  0xd3   :  { %v890_v2 = vpop.f32.mrf.mxu0 }
  0xd4   :  { %v304_v9 = vmax.f32 %v250_v5, 0.0 }
  0xd5   :  { %v252_v6 = vpop.f32.mrf.mxu0 }
  0xd6   :  { %v253_v7 = vadd.f32 %v252_v6, %v72_v4  ;;  %v995_v6 = vld [vmem:[%s1390_s3 + $0x10] sm:$0xff]  }
  0xd7   :  { %v891_v8 = vpop.f32.mrf.mxu0 }
  0xd8   :  { %v305_v10 = vmax.f32 %v253_v7, 0.0  ;;  %v996_v7 = vld [vmem:[%s1390_s3 + $0x18] sm:$0xff]   ;;  %v997_v8 = vld [vmem:[%s1390_s3 + $0x20] sm:$0xff]  }
  0xd9   :  { %v257_v11 = vpop.f32.mrf.mxu0 }
  0xda   :  { %v1257_v12 = vpack.c.bf16 %v305_v10, %v304_v9  ;;  %v998_v9 = vld [vmem:[%s1390_s3 + $0x28] sm:$0xff]   ;;  %v999_v10 = vld [vmem:[%s1390_s3 + $0x30] sm:$0xff]  }
  0xdb   :  { %v894_v13 = vpop.f32.mrf.mxu0 }
  0xdc   :  { %v1002_v13 = vld [vmem:[%s1390_s3 + $0x48] sm:$0xff]  }
  0xdd   :  { %v260_v14 = vpop.f32.mrf.mxu0 }
  0xdf   :  { %v895_v15 = vpop.f32.mrf.mxu0 }
  0xe0   :  { %v442_v15 = vpop.permute.xlu0 %441 }
  0xe1   :  { %v265_v16 = vpop.f32.mrf.mxu0 }
  0xe2   :  { %v266_v63 = vadd.f32 %v265_v16, %v87_v59  ;;  %v447_v16 = vpop.permute.xlu1 %446 }
  0xe3   :  { %v898_v17 = vpop.f32.mrf.mxu0 }
  0xe4   :  { %v308_v4 = vmax.f32 %v266_v63, 0.0  ;;  %v432_v17 = vpop.permute.xlu0 %431 }
  0xe5   :  { %v268_v18 = vpop.f32.mrf.mxu0 }
  0xe7   :  { %v899_v19 = vpop.f32.mrf.mxu0 }
  0xe8   :  { %v1332_v19 = vpop.permute.xlu0 %421 }
  0xe9   :  { %v273_v20 = vpop.f32.mrf.mxu0 }
  0xea   :  { %v274_v50 = vadd.f32 %v273_v20, %v97_v57 }
  0xeb   :  { %v902_v21 = vpop.f32.mrf.mxu0 }
  0xec   :  { %v1336_v21 = vpop.permute.xlu0 %411 }
  0xed   :  { %v276_v22 = vpop.f32.mrf.mxu0 }
  0xee   :  { %v277_v47 = vadd.f32 %v276_v22, %v102_v58  ;;  %v258_v58 = vadd.f32 %v257_v11, %v1253_v61  ;;  %v994_v61 = vld [vmem:[%s1390_s3 + $0x8] sm:$0xff]   ;;  %v1000_v11 = vld [vmem:[%s1390_s3 + $0x38] sm:$0xff]  }
  0xef   :  { %v903_v23 = vpop.f32.mrf.mxu0 }
  0xf0   :  { %v1343_v23 = vpop.permute.xlu0 %401 }
  0xf1   :  { %v281_v24 = vpop.f32.mrf.mxu0 }
  0xf2   :  { %v282_v45 = vadd.f32 %v281_v24, %v107_v55  ;;  %v261_v55 = vadd.f32 %v260_v14, %v1255_v62  ;;  %v993_v62 = vld [vmem:[%s1390_s3] sm:$0xff]   ;;  %v1003_v14 = vld [vmem:[%s1390_s3 + $0x50] sm:$0xff]  }
  0xf3   :  { %v906_v25 = vpop.f32.mrf.mxu0 }
  0xf4   :  { %v307_v57 = vmax.f32 %v261_v55, 0.0  ;;  %v1347_v25 = vpop.permute.xlu0 %391 }
  0xf5   :  { %v284_v26 = vpop.f32.mrf.mxu0 }
  0xf6   :  { %v285_v42 = vadd.f32 %v284_v26, %v112_v56  ;;  %v310_v56 = vmax.f32 %v274_v50, 0.0 }
  0xf7   :  { %v907_v27 = vpop.f32.mrf.mxu0 }
  0xf8   :  { %v313_v48 = vmax.f32 %v285_v42, 0.0  ;;  %v382_v27 = vpop.permute.xlu0 %381 }
  0xf9   :  { %v289_v28 = vpop.f32.mrf.mxu0 }
  0xfa   :  { %v290_v39 = vadd.f32 %v289_v28, %v117_v52  ;;  %v311_v52 = vmax.f32 %v277_v47, 0.0 }
  0xfb   :  { %v910_v29 = vpop.f32.mrf.mxu0 }
  0xfc   :  { %v314_v46 = vmax.f32 %v290_v39, 0.0  ;;  %v321_v2 = vpack.c.bf16 %v311_v52, %v310_v56 }
  0xfd   :  { %v292_v30 = vpop.f32.mrf.mxu0 }
  0xfe   :  { %v293_v36 = vadd.f32 %v292_v30, %v122_v54  ;;  %v372_v30 = vpop.permute.xlu0 %371 }
  0xff   :  { %v911_v31 = vpop.f32.mrf.mxu0 }
 0x100   :  { %v315_v43 = vmax.f32 %v293_v36, 0.0 }
 0x101   :  { %v297_v32 = vpop.f32.mrf.mxu0 }
 0x102   :  { %v298_v34 = vadd.f32 %v297_v32, %v127_v51  ;;  %v323_v49 = vpack.c.bf16 %v315_v43, %v314_v46  ;;  %v312_v51 = vmax.f32 %v282_v45, 0.0 }
 0x103   :  { %v914_v33 = vpop.f32.mrf.mxu0 }
 0x104   :  { %v316_v40 = vmax.f32 %v298_v34, 0.0  ;;  %v322_v54 = vpack.c.bf16 %v313_v48, %v312_v51 }
 0x105   :  { %v300_v35 = vpop.f32.mrf.mxu0 }
 0x106   :  { %v301_v37 = vadd.f32 %v300_v35, %v132_v53  ;;  %v269_v53 = vadd.f32 %v268_v18, %v92_v60  ;;  %v306_v60 = vmax.f32 %v258_v58, 0.0  ;;  %v437_v18 = vpop.permute.xlu1 %436 }
 0x107   :  { %v915_v38 = vpop.f32.mrf.mxu0 }
 0x108   :  { %v317_v41 = vmax.f32 %v301_v37, 0.0  ;;  %v309_v0 = vmax.f32 %v269_v53, 0.0  ;;  %v319_v59 = vpack.c.bf16 %v307_v57, %v306_v60 }
 0x10a   :  { %v324_v44 = vpack.c.bf16 %v317_v41, %v316_v40  ;;  %v320_v5 = vpack.c.bf16 %v309_v0, %v308_v4  ;;  %v1334_v20 = vpop.permute.xlu1 %426 }
 0x10c   :  { %917 = vmatpush3.bf16.msra.mxu1 %v324_v44 }
 0x10d   :  { %918 = vmatprep.subr.bf16.mxu1 %v1029_v1 }
 0x10e   :  { %v1341_v22 = vpop.permute.xlu1 %416 }
 0x110   :  { %919 = vmatpush3.bf16.msra.mxu1 %v323_v49 }
 0x111   :  { %920 = vmatprep.subr.bf16.mxu1 %v1029_v1 }
 0x112   :  { %v1345_v24 = vpop.permute.xlu1 %406 }
 0x114   :  { %921 = vmatpush3.bf16.msra.mxu1 %v322_v54 }
 0x115   :  { %922 = vmatprep.subr.bf16.mxu1 %v1029_v1 }
 0x116   :  { %v1349_v26 = vpop.permute.xlu1 %396 }
 0x118   :  { %923 = vmatpush3.bf16.msra.mxu1 %v321_v2 }
 0x119   :  { %924 = vmatprep.subr.bf16.mxu1 %v1029_v1 }
 0x11a   :  { %v387_v28 = vpop.permute.xlu1 %386 }
 0x11c   :  { %925 = vmatpush3.bf16.msra.mxu1 %v320_v5 }
 0x11d   :  { %926 = vmatprep.subr.bf16.mxu1 %v1029_v1 }
 0x11e   :  { %v377_v33 = vpop.permute.xlu1 %376 }
 0x120   :  { %927 = vmatpush3.bf16.msra.mxu1 %v319_v59 }
 0x121   :  { %928 = vmatprep.subr.bf16.mxu1 %v1029_v1 }
 0x124   :  { %929 = vmatpush3.bf16.msra.mxu1 %v1257_v12  ;;  %v1001_v12 = vld [vmem:[%s1390_s3 + $0x40] sm:$0xff]  }
 0x127   :  { %931 = vmatmul.mubr.msk.bf16.vlgmr.msra.gmra.mxu1 %vm534_vm2, %v993_v62 }
 0x128   :  { %934 = vmatprep.mubr.msk.bf16.mxu1 %vm1030_vm0, %v1029_v1 }
 0x12f   :  { %935 = vmatmul.mubr.msk.bf16.gmra.mxu1 %vm534_vm2, %v994_v61 }
 0x130   :  { %938 = vmatprep.mubr.msk.bf16.mxu1 %vm1030_vm0, %v1029_v1 }
 0x137   :  { %939 = vmatmul.mubr.msk.bf16.gmra.mxu1 %vm534_vm2, %v995_v6 }
 0x138   :  { %942 = vmatprep.mubr.msk.bf16.mxu1 %vm1030_vm0, %v1029_v1 }
 0x13f   :  { %943 = vmatmul.mubr.msk.bf16.gmra.mxu1 %vm534_vm2, %v996_v7 }
 0x140   :  { %946 = vmatprep.mubr.msk.bf16.mxu1 %vm1030_vm0, %v1029_v1 }
 0x147   :  { %947 = vmatmul.mubr.msk.bf16.gmra.mxu1 %vm534_vm2, %v997_v8 }
 0x148   :  { %950 = vmatprep.mubr.msk.bf16.mxu1 %vm1030_vm0, %v1029_v1 }
 0x14f   :  { %951 = vmatmul.mubr.msk.bf16.gmra.mxu1 %vm534_vm2, %v998_v9 }
 0x150   :  { %954 = vmatprep.mubr.msk.bf16.mxu1 %vm1030_vm0, %v1029_v1 }
 0x157   :  { %955 = vmatmul.mubr.msk.bf16.gmra.mxu1 %vm534_vm2, %v999_v10 }
 0x158   :  { %958 = vmatprep.mubr.msk.bf16.mxu1 %vm1030_vm0, %v1029_v1 }
 0x15f   :  { %959 = vmatmul.mubr.msk.bf16.gmra.mxu1 %vm534_vm2, %v1000_v11 }
 0x160   :  { %962 = vmatprep.mubr.msk.bf16.mxu1 %vm1030_vm0, %v1029_v1 }
 0x167   :  { %963 = vmatmul.mubr.msk.bf16.gmra.mxu1 %vm534_vm2, %v1001_v12 }
 0x168   :  { %966 = vmatprep.mubr.msk.bf16.mxu1 %vm1030_vm0, %v1029_v1 }
 0x16f   :  { %967 = vmatmul.mubr.msk.bf16.gmra.mxu1 %vm534_vm2, %v1002_v13 }
 0x170   :  { %970 = vmatprep.mubr.msk.bf16.mxu1 %vm1030_vm0, %v1029_v1  ;;  %v1006_v1 = vld [vmem:[%s1392_s5 + $0x4] ss:$8 sps:$4 sm:$0xff]  }
 0x171   :  { %850 = vmatprep.mubr.msk.bf16.mxu0 %vm745_vm3, %v1006_v1 }
 0x177   :  { %971 = vmatmul.mubr.msk.bf16.gmra.mxu1 %vm534_vm2, %v1003_v14 }
 0x1e7   :  { %v602_v29 = vpop.f32.mrf.mxu1 }
 0x1e8   :  { %v603_v32 = vadd.f32 %v602_v29, %v372_v30 }
 0x1e9   :  { %v932_v31 = vpop.f32.mrf.mxu1 }
 0x1ea   :  { %v689_v37 = vmax.f32 %v603_v32, 0.0 }
 0x1eb   :  { %v605_v34 = vpop.f32.mrf.mxu1 }
 0x1ec   :  { %v606_v35 = vadd.f32 %v605_v34, %v377_v33 }
 0x1ed   :  { %v933_v36 = vpop.f32.mrf.mxu1 }
 0x1ee   :  { %v690_v38 = vmax.f32 %v606_v35, 0.0 }
 0x1ef   :  { %v610_v39 = vpop.f32.mrf.mxu1 }
 0x1f0   :  { %v1351_v40 = vpack.c.bf16 %v690_v38, %v689_v37  ;;  %v611_v42 = vadd.f32 %v610_v39, %v382_v27 }
 0x1f1   :  { %v936_v41 = vpop.f32.mrf.mxu1 }
 0x1f2   :  { %v691_v46 = vmax.f32 %v611_v42, 0.0 }
 0x1f3   :  { %v613_v43 = vpop.f32.mrf.mxu1 }
 0x1f4   :  { %v614_v44 = vadd.f32 %v613_v43, %v387_v28 }
 0x1f5   :  { %v937_v45 = vpop.f32.mrf.mxu1 }
 0x1f6   :  { %v692_v47 = vmax.f32 %v614_v44, 0.0 }
 0x1f7   :  { %v1353_v48 = vpop.f32.mrf.mxu1 }
 0x1f8   :  { %v1355_v49 = vpack.c.bf16 %v692_v47, %v691_v46  ;;  %v619_v47 = vadd.f32 %v1353_v48, %v1347_v25 }
 0x1f9   :  { %v940_v50 = vpop.f32.mrf.mxu1 }
 0x1fb   :  { %v621_v51 = vpop.f32.mrf.mxu1 }
 0x1fc   :  { %v622_v44 = vadd.f32 %v621_v51, %v1349_v26  ;;  %v472_v51 = vpop.permute.xlu0 %471 }
 0x1fd   :  { %v941_v53 = vpop.f32.mrf.mxu1 }
 0x1fe   :  { %v694_v53 = vmax.f32 %v622_v44, 0.0 }
 0x1ff   :  { %v626_v52 = vpop.f32.mrf.mxu1 }
 0x200   :  { %v627_v42 = vadd.f32 %v626_v52, %v1343_v23 }
 0x201   :  { %v944_v54 = vpop.f32.mrf.mxu1 }
 0x202   :  { %v695_v50 = vmax.f32 %v627_v42, 0.0  ;;  %v693_v54 = vmax.f32 %v619_v47, 0.0 }
 0x203   :  { %v629_v63 = vpop.f32.mrf.mxu1 }
 0x204   :  { %v630_v38 = vadd.f32 %v629_v63, %v1345_v24  ;;  %v477_v63 = vpop.permute.xlu1 %476  ;;  %v713_v26 = vpack.c.bf16 %v694_v53, %v693_v54 }
 0x205   :  { %v945_v56 = vpop.f32.mrf.mxu1 }
 0x207   :  { %v634_v55 = vpop.f32.mrf.mxu1 }
 0x208   :  { %v635_v36 = vadd.f32 %v634_v55, %v1336_v21  ;;  %v696_v21 = vmax.f32 %v630_v38, 0.0  ;;  %v467_v48 = vpop.permute.xlu1 %466 }
 0x209   :  { %v948_v0 = vpop.f32.mrf.mxu1 }
 0x20a   :  { %v697_v43 = vmax.f32 %v635_v36, 0.0  ;;  %v714_v23 = vpack.c.bf16 %v696_v21, %v695_v50 }
 0x20b   :  { %v637_v2 = vpop.f32.mrf.mxu1 }
 0x20d   :  { %v949_v58 = vpop.f32.mrf.mxu1 }
 0x20f   :  { %v642_v4 = vpop.f32.mrf.mxu1 }
 0x210   :  { %v643_v33 = vadd.f32 %v642_v4, %v1332_v19 }
 0x211   :  { %v952_v57 = vpop.f32.mrf.mxu1 }
 0x212   :  { %v699_v37 = vmax.f32 %v643_v33, 0.0 }
 0x213   :  { %v645_v5 = vpop.f32.mrf.mxu1 }
 0x214   :  { %v646_v29 = vadd.f32 %v645_v5, %v1334_v20 }
 0x215   :  { %v953_v60 = vpop.f32.mrf.mxu1 }
 0x216   :  { %v457_v60 = vpop.permute.xlu1 %456 }
 0x217   :  { %v650_v59 = vpop.f32.mrf.mxu1 }
 0x218   :  { %v651_v14 = vadd.f32 %v650_v59, %v432_v17 }
 0x219   :  { %v956_v62 = vpop.f32.mrf.mxu1 }
 0x21a   :  { %v701_v34 = vmax.f32 %v651_v14, 0.0 }
 0x21b   :  { %v653_v61 = vpop.f32.mrf.mxu1 }
 0x21c   :  { %v654_v11 = vadd.f32 %v653_v61, %v437_v18 }
 0x21d   :  { %v957_v6 = vpop.f32.mrf.mxu1 }
 0x21e   :  { %v702_v30 = vmax.f32 %v654_v11, 0.0  ;;  %v1004_v11 = vld [vmem:[%s1392_s5] ss:$8 sps:$4 sm:$0xff]  }
 0x21f   :  { %v658_v7 = vpop.f32.mrf.mxu1 }
 0x220   :  { %v659_v9 = vadd.f32 %v658_v7, %v442_v15  ;;  %v638_v15 = vadd.f32 %v637_v2, %v1341_v22  ;;  %v717_v17 = vpack.c.bf16 %v702_v30, %v701_v34  ;;  %v462_v2 = vpop.permute.xlu0 %461 }
 0x221   :  { %v960_v8 = vpop.f32.mrf.mxu1 }
 0x222   :  { %v703_v1 = vmax.f32 %v659_v9, 0.0  ;;  %v698_v19 = vmax.f32 %v638_v15, 0.0 }
 0x223   :  { %v661_v10 = vpop.f32.mrf.mxu1 }
 0x224   :  { %v662_v12 = vadd.f32 %v661_v10, %v447_v16  ;;  %v700_v16 = vmax.f32 %v646_v29, 0.0  ;;  %v715_v45 = vpack.c.bf16 %v698_v19, %v697_v43  ;;  %v452_v6 = vpop.permute.xlu0 %451 }
 0x225   :  { %v961_v13 = vpop.f32.mrf.mxu1 }
 0x226   :  { %v704_v27 = vmax.f32 %v662_v12, 0.0  ;;  %v716_v39 = vpack.c.bf16 %v700_v16, %v699_v37 }
 0x227   :  { %v1357_v28 = vpop.f32.mrf.mxu1 }
 0x228   :  { %v718_v31 = vpack.c.bf16 %v704_v27, %v703_v1  ;;  %v667_v7 = vadd.f32 %v1357_v28, %v452_v6  ;;  %v729_v12 = vpop.permute.xlu0 %728  ;;  %v734_v27 = vpop.permute.xlu1 %733 }
 0x229   :  { %v964_v32 = vpop.f32.mrf.mxu1 }
 0x22a   :  { %750 = vmatpush1.bf16.msra.mxu0 %v718_v31  ;;  %v705_v10 = vmax.f32 %v667_v7, 0.0 }
 0x22b   :  { %v669_v35 = vpop.f32.mrf.mxu1  ;;  %751 = vmatprep.subr.bf16.mxu0 %v1031_v3 }
 0x22c   :  { %v670_v59 = vadd.f32 %v669_v35, %v457_v60 }
 0x22d   :  { %v965_v18 = vpop.f32.mrf.mxu1 }
 0x22e   :  { %752 = vmatpush1.bf16.msra.mxu0 %v717_v17 }
 0x22f   :  { %v674_v20 = vpop.f32.mrf.mxu1  ;;  %753 = vmatprep.subr.bf16.mxu0 %v1031_v3 }
 0x230   :  { %v675_v57 = vadd.f32 %v674_v20, %v462_v2 }
 0x231   :  { %v968_v41 = vpop.f32.mrf.mxu1 }
 0x232   :  { %754 = vmatpush1.bf16.msra.mxu0 %v716_v39  ;;  %v707_v8 = vmax.f32 %v675_v57, 0.0 }
 0x233   :  { %v677_v22 = vpop.f32.mrf.mxu1  ;;  %755 = vmatprep.subr.bf16.mxu0 %v1031_v3 }
 0x234   :  { %v678_v58 = vadd.f32 %v677_v22, %v467_v48 }
 0x235   :  { %v969_v46 = vpop.f32.mrf.mxu1 }
 0x236   :  { %756 = vmatpush1.bf16.msra.mxu0 %v715_v45  ;;  %v708_v62 = vmax.f32 %v678_v58, 0.0 }
 0x237   :  { %v682_v24 = vpop.f32.mrf.mxu1  ;;  %757 = vmatprep.subr.bf16.mxu0 %v1031_v3 }
 0x238   :  { %v683_v0 = vadd.f32 %v682_v24, %v472_v51  ;;  %v720_v9 = vpack.c.bf16 %v708_v62, %v707_v8 }
 0x239   :  { %v972_v52 = vpop.f32.mrf.mxu1 }
 0x23a   :  { %758 = vmatpush1.bf16.msra.mxu0 %v714_v23  ;;  %v709_v5 = vmax.f32 %v683_v0, 0.0 }
 0x23b   :  { %v685_v56 = vpop.f32.mrf.mxu1  ;;  %759 = vmatprep.subr.bf16.mxu0 %v1031_v3 }
 0x23c   :  { %v686_v25 = vadd.f32 %v685_v56, %v477_v63 }
 0x23d   :  { %v973_v55 = vpop.f32.mrf.mxu1 }
 0x23e   :  { %760 = vmatpush1.bf16.msra.mxu0 %v713_v26  ;;  %v710_v4 = vmax.f32 %v686_v25, 0.0 }
 0x23f   :  { %761 = vmatprep.subr.bf16.mxu0 %v1031_v3 }
 0x240   :  { %v721_v61 = vpack.c.bf16 %v710_v4, %v709_v5 }
 0x242   :  { %762 = vmatpush1.bf16.msra.mxu0 %v1355_v49  ;;  %v706_v49 = vmax.f32 %v670_v59, 0.0 }
 0x243   :  { %763 = vmatprep.subr.bf16.mxu0 %v1031_v3 }
 0x246   :  { %764 = vmatpush1.bf16.msra.mxu0 %v1351_v40  ;;  %v719_v40 = vpack.c.bf16 %v706_v49, %v705_v10 }
 0x247   :  { %775 = vmatprep.subr.bf16.mxu0 %v1031_v3 }
 0x24a   :  { %776 = vmatpush2.bf16.msra.mxu0 %v721_v61 }
 0x24b   :  { %777 = vmatprep.subr.bf16.mxu0 %v1031_v3 }
 0x24e   :  { %778 = vmatpush2.bf16.msra.mxu0 %v720_v9 }
 0x24f   :  { %779 = vmatprep.subr.bf16.mxu0 %v1031_v3 }
 0x252   :  { %780 = vmatpush2.bf16.msra.mxu0 %v719_v40 }
 0x255   :  { %782 = vmatmul.mubr.bf16.vlgmr.msra.gmra.mxu0 %v1004_v11 }
 0x315   :  { %v783_v13 = vpop.f32.mrf.mxu0 }
 0x316   :  { %v784_v14 = vadd.f32 %v783_v13, %v729_v12 }
 0x317   :  { %v785_v1 = vpop.f32.mrf.mxu0 }
 0x318   :  { %790 = vst [vmem:[#allocation2] sm:$0xff] %v784_v14 }
 0x319   :  { %v786_v28 = vpop.f32.mrf.mxu0 }
 0x31a   :  { %v787_v29 = vadd.f32 %v786_v28, %v734_v27 }
 0x31b   :  { %v788_v30 = vpop.f32.mrf.mxu0 }
 0x31c   :  { %791 = vst [vmem:[#allocation2 + $0x8] sm:$0xff] %v787_v29 }
 0x31d   :  { %1018 = shalt.err (!%p1015_p4)
}
 0x31e   :  { %s1033_s5 = smov 128   ;;  %s1034_s4 = smov 8  }
 0x31f   :  { %803 = dma.vmem_to_hbm [thread:$0]  %s798_s21, 256, %s1394_s7, [#allocation3], %s1033_s5, %s1033_s5, %s1034_s4  }
 0x320   :  { %1027 = dma.done.wait [#allocation3], 256  }
 0x321   :  { %1028 = vsyncadd [#allocation3], 4294967040 }
 0x322   :  { %807 = vsyncpa [#allocation3], 1 }

</bundles_post_ra>
